<compile_context>
chip_gen: v7x
topology: tpu7x:2x2x1
jax: 0.10.0
libtpu: 0.0.40
codegen_flags: <defaults>
</compile_context>

<pallas_src>
import functools

import jax
import jax.numpy as jnp
from jax import lax
from jax.experimental import pallas as pl
from jax.experimental.pallas import tpu as pltpu


def _round_up(x, m):
    return (x + m - 1) // m * m


# --------------------------------------------------------------------------
# Phase 1: parallel x-projection   Xproj = x @ [Wx_h | Wx_o] + [b_h | b_o]
# --------------------------------------------------------------------------
def xproj_kernel(x_ref, wx_ref, b_ref, ph_ref, po_ref, *, h_pad):
    # x_ref : [M, I]            chunk of T_chunk*B_pad flattened (t, b) rows
    # wx_ref: [I, H_pad+O_pad]  fused input-weight (resident)
    # b_ref : [1, H_pad+O_pad]  fused bias, f32 (resident)
    # ph_ref: [M, H_pad]        x-contribution + bias for the hidden update (f32)
    # po_ref: [M, O_pad]        x-contribution + bias for the output (f32)
    acc = (
        jnp.dot(x_ref[...], wx_ref[...], preferred_element_type=jnp.float32)
        + b_ref[...]
    )
    ph_ref[...] = acc[:, :h_pad]
    po_ref[...] = acc[:, h_pad:]


# --------------------------------------------------------------------------
# Phase 2: sequential recurrence, T_chunk timesteps per grid step
# --------------------------------------------------------------------------
def recurrence_kernel(ph_ref, h0_ref, wh_ref, hprev_ref, hlast_ref, h_acc,
                      *, t_chunk, b_pad, seq_len, w_dtype):
    # ph_ref   : [T_chunk*B_pad, H_pad]  streamed x-projection (f32, bias folded in)
    # h0_ref   : [B_pad, H_pad]          initial hidden, f32 (resident)
    # wh_ref   : [H_pad, H_pad]          hidden->hidden weight (resident)
    # hprev_ref: [T_chunk*B_pad, H_pad]  streamed OUT: h_{t-1} used at step t
    # hlast_ref: [B_pad, H_pad]          resident OUT: final hidden
    # h_acc    : [B_pad, H_pad] f32      VMEM scratch carry (persists across grid)
    c = pl.program_id(0)

    @pl.when(c == 0)
    def _():
        h_acc[...] = h0_ref[...]

    def step(t, h_prev):
        row = pl.multiple_of(t * b_pad, b_pad)
        # Stash the hidden used by this step (needed for y_t in phase 3).
        hprev_ref[pl.ds(row, b_pad), :] = h_prev.astype(hprev_ref.dtype)
        h_new = jnp.maximum(
            ph_ref[pl.ds(row, b_pad), :]
            + jnp.dot(h_prev.astype(w_dtype), wh_ref[...],
                      preferred_element_type=jnp.float32),
            0.0,
        )
        if seq_len % t_chunk == 0:
            return h_new
        # Mask out padded timesteps so the final hidden is not corrupted.
        t_glob = c * t_chunk + t
        return jnp.where(t_glob < seq_len, h_new, h_prev)

    h_acc[...] = lax.fori_loop(0, t_chunk, step, h_acc[...], unroll=True)

    @pl.when(c == pl.num_programs(0) - 1)
    def _():
        hlast_ref[...] = h_acc[...].astype(hlast_ref.dtype)


# --------------------------------------------------------------------------
# Phase 3: parallel output GEMM   y_t = Xproj_o[t] + h_{t-1} @ Wh_o
# --------------------------------------------------------------------------
def output_kernel(po_ref, hprev_ref, who_ref, y_ref):
    acc = po_ref[...] + jnp.dot(hprev_ref[...], who_ref[...],
                                preferred_element_type=jnp.float32)
    y_ref[...] = acc.astype(y_ref.dtype)


# --------------------------------------------------------------------------
# One-time weight preparation (outside the step path)
# --------------------------------------------------------------------------
def prepare_params(w_i2h, b_i2h, w_i2o, b_i2o, dtype=jnp.float32):
    """Transpose, split into x-rows / h-rows, fuse the two layers column-wise,
    zero-pad H/O to lane multiples of 128.  Padded weight columns and bias
    lanes are zero, so padded hidden lanes stay exactly zero across steps.
    (On v6e/v7x with production sizes, rounding H_pad to 256 keeps each serial
    dot a single full-width MXU pass.)"""
    H, IH = w_i2h.shape          # PyTorch layout: i2h.weight is [H, I+H]
    O = w_i2o.shape[0]           #                 i2o.weight is [O, I+H]
    I = IH - H
    H_pad = _round_up(H, 128)
    O_pad = _round_up(O, 128)
    HO_pad = H_pad + O_pad

    wt_i2h = w_i2h.T.astype(jnp.float32)   # [I+H, H]
    wt_i2o = w_i2o.T.astype(jnp.float32)   # [I+H, O]

    # Fused input-rows weight: [I, H_pad + O_pad]
    Wx = jnp.zeros((I, HO_pad), jnp.float32)
    Wx = Wx.at[:, :H].set(wt_i2h[:I])
    Wx = Wx.at[:, H_pad:H_pad + O].set(wt_i2o[:I])

    # Hidden-rows weights (separate: H part stays serial, O part goes parallel).
    Wh_h = jnp.zeros((H_pad, H_pad), jnp.float32).at[:H, :H].set(wt_i2h[I:])
    Wh_o = jnp.zeros((H_pad, O_pad), jnp.float32).at[:H, :O].set(wt_i2o[I:])

    # Fused bias stays f32 (added to the f32 accumulator).
    b = jnp.zeros((1, HO_pad), jnp.float32)
    b = b.at[0, :H].set(b_i2h.astype(jnp.float32))
    b = b.at[0, H_pad:H_pad + O].set(b_i2o.astype(jnp.float32))

    return dict(
        Wx=Wx.astype(dtype), Wh_h=Wh_h.astype(dtype), Wh_o=Wh_o.astype(dtype),
        b=b, I=I, H=H, O=O, H_pad=H_pad, O_pad=O_pad,
    )


# --------------------------------------------------------------------------
# Sequence driver
# --------------------------------------------------------------------------
def rnn_forward_seq(xs, h0, params, *, t_chunk=16):
    """Run the RNN cell over a sequence.

    xs : [T, B, I]   inputs per timestep
    h0 : [B, H]      initial hidden
    returns (ys [T, B, O], h_final [B, H]) with PyTorch forward semantics:
    y_t uses the *old* hidden h_{t-1}.
    """
    T, B, I = xs.shape
    H, O = params["H"], params["O"]
    H_pad, O_pad = params["H_pad"], params["O_pad"]
    HO_pad = H_pad + O_pad
    w_dtype = params["Wx"].dtype
    out_dtype = xs.dtype

    # bf16 packs 2 rows per sublane -> round the sublane (batch) dim to 16.
    sublane = 16 if w_dtype == jnp.bfloat16 else 8
    B_pad = _round_up(B, sublane)
    TC = max(1, min(t_chunk, T))          # timesteps folded into one grid step
    T_pad = _round_up(T, TC)
    NT = T_pad // TC
    M = TC * B_pad                        # flattened (t, b) rows per grid step

    # Pad once; all kernel blocks are lane/sublane dense and unmasked.
    xs_p = jnp.zeros((T_pad, B_pad, I), w_dtype).at[:T, :B].set(xs.astype(w_dtype))
    xs2 = xs_p.reshape(T_pad * B_pad, I)
    h0_p = jnp.zeros((B_pad, H_pad), jnp.float32).at[:B, :H].set(
        h0.astype(jnp.float32))

    # ---- Phase 1: parallel x-projection (bias folded in) -----------------
    ph, po = pl.pallas_call(
        functools.partial(xproj_kernel, h_pad=H_pad),
        out_shape=(
            jax.ShapeDtypeStruct((T_pad * B_pad, H_pad), jnp.float32),
            jax.ShapeDtypeStruct((T_pad * B_pad, O_pad), jnp.float32),
        ),
        grid_spec=pltpu.PrefetchScalarGridSpec(
            num_scalar_prefetch=0,
            grid=(NT,),
            in_specs=[
                pl.BlockSpec((M, I), lambda c: (c, 0)),
                pl.BlockSpec((I, HO_pad), lambda c: (0, 0)),
                pl.BlockSpec((1, HO_pad), lambda c: (0, 0)),
            ],
            out_specs=[
                pl.BlockSpec((M, H_pad), lambda c: (c, 0)),
                pl.BlockSpec((M, O_pad), lambda c: (c, 0)),
            ],
        ),
        compiler_params=pltpu.CompilerParams(
            dimension_semantics=("parallel",)),
    )(xs2, params["Wx"], params["b"])

    # ---- Phase 2: sequential recurrence (H columns only) ------------------
    hprev, hlast = pl.pallas_call(
        functools.partial(recurrence_kernel, t_chunk=TC, b_pad=B_pad,
                          seq_len=T, w_dtype=w_dtype),
        out_shape=(
            jax.ShapeDtypeStruct((T_pad * B_pad, H_pad), w_dtype),
            jax.ShapeDtypeStruct((B_pad, H_pad), out_dtype),
        ),
        grid_spec=pltpu.PrefetchScalarGridSpec(
            num_scalar_prefetch=0,
            grid=(NT,),
            in_specs=[
                pl.BlockSpec((M, H_pad), lambda c: (c, 0)),       # xproj_h streams
                pl.BlockSpec((B_pad, H_pad), lambda c: (0, 0)),   # h0 resident
                pl.BlockSpec((H_pad, H_pad), lambda c: (0, 0)),   # Wh_h resident
            ],
            out_specs=[
                pl.BlockSpec((M, H_pad), lambda c: (c, 0)),       # h_{t-1} streams
                pl.BlockSpec((B_pad, H_pad), lambda c: (0, 0)),   # final hidden
            ],
            scratch_shapes=[pltpu.VMEM((B_pad, H_pad), jnp.float32)],
        ),
        compiler_params=pltpu.CompilerParams(
            dimension_semantics=("arbitrary",)),   # recurrence is sequential
    )(ph, h0_p, params["Wh_h"])

    # ---- Phase 3: parallel output GEMM ------------------------------------
    y = pl.pallas_call(
        output_kernel,
        out_shape=jax.ShapeDtypeStruct((T_pad * B_pad, O_pad), out_dtype),
        grid_spec=pltpu.PrefetchScalarGridSpec(
            num_scalar_prefetch=0,
            grid=(NT,),
            in_specs=[
                pl.BlockSpec((M, O_pad), lambda c: (c, 0)),
                pl.BlockSpec((M, H_pad), lambda c: (c, 0)),
                pl.BlockSpec((H_pad, O_pad), lambda c: (0, 0)),
            ],
            out_specs=pl.BlockSpec((M, O_pad), lambda c: (c, 0)),
        ),
        compiler_params=pltpu.CompilerParams(
            dimension_semantics=("parallel",)),
    )(po, hprev, params["Wh_o"])

    ys = y.reshape(T_pad, B_pad, O_pad)[:T, :B, :O]
    h_final = hlast[:B, :H]
    return ys, h_final


def rnn_forward(x, hidden, params):
    """Single-step API matching RNN.forward(input, hidden) -> (output, hidden)."""
    ys, h_new = rnn_forward_seq(x[None], hidden, params, t_chunk=1)
    return ys[0], h_new


def init_params(key, input_size, hidden_size, output_size, dtype=jnp.float32):
    """Deterministic PyTorch-style uniform(-1/sqrt(fan_in), 1/sqrt(fan_in)) init."""
    k1, k2, k3, k4 = jax.random.split(key, 4)
    fan_in = input_size + hidden_size
    bound = 1.0 / jnp.sqrt(fan_in)
    w_i2h = jax.random.uniform(k1, (hidden_size, fan_in), dtype, -bound, bound)
    b_i2h = jax.random.uniform(k2, (hidden_size,), dtype, -bound, bound)
    w_i2o = jax.random.uniform(k3, (output_size, fan_in), dtype, -bound, bound)
    b_i2o = jax.random.uniform(k4, (output_size,), dtype, -bound, bound)
    return w_i2h, b_i2h, w_i2o, b_i2o


if __name__ == "__main__":
    input_size, hidden_size, output_size = 16, 32, 8
    batch, seq_len = 4, 8

    key = jax.random.PRNGKey(0)
    kp, kx, kh = jax.random.split(key, 3)
    w_i2h, b_i2h, w_i2o, b_i2o = init_params(kp, input_size, hidden_size, output_size)

    xs = jax.random.normal(kx, (seq_len, batch, input_size), jnp.float32)
    h0 = jax.random.normal(kh, (batch, hidden_size), jnp.float32)

    # Plain-JAX reference of the PyTorch forward, unrolled over the sequence.
    h = h0
    ref_ys = []
    for t in range(seq_len):
        combined = jnp.concatenate([xs[t], h], axis=1)
        ref_ys.append(combined @ w_i2o.T + b_i2o)          # output uses old hidden
        h = jnp.maximum(combined @ w_i2h.T + b_i2h, 0.0)    # hidden update
    ref_ys = jnp.stack(ref_ys)
    ref_hT = h
    ref_h1 = jnp.maximum(
        jnp.concatenate([xs[0], h0], axis=1) @ w_i2h.T + b_i2h, 0.0)

    # ---- f32 weights: tight correctness check ----------------------------
    params = prepare_params(w_i2h, b_i2h, w_i2o, b_i2o, dtype=jnp.float32)

    ys, h_final = rnn_forward_seq(xs, h0, params, t_chunk=8)
    jax.block_until_ready((ys, h_final))

    out1, h1 = rnn_forward(xs[0], h0, params)
    jax.block_until_ready((out1, h1))

    assert jnp.allclose(ys, ref_ys, atol=1e-4, rtol=1e-4), "sequence output mismatch"
    assert jnp.allclose(h_final, ref_hT, atol=1e-4, rtol=1e-4), "final hidden mismatch"
    assert jnp.allclose(out1, ref_ys[0], atol=1e-4, rtol=1e-4), "single-step output mismatch"
    assert jnp.allclose(h1, ref_h1, atol=1e-4, rtol=1e-4), "single-step hidden mismatch"

    # ---- bf16 MXU-operand mode: f32 carry + f32 accumulation, loose check --
    params_bf16 = prepare_params(w_i2h, b_i2h, w_i2o, b_i2o, dtype=jnp.bfloat16)
    ys_bf, h_bf = rnn_forward_seq(xs, h0, params_bf16, t_chunk=8)
    jax.block_until_ready((ys_bf, h_bf))
    assert jnp.allclose(ys_bf, ref_ys, atol=1e-1, rtol=1e-1), "bf16 output mismatch"
    assert jnp.allclose(h_bf, ref_hT, atol=1e-1, rtol=1e-1), "bf16 hidden mismatch"

    print("KERNEL_OK")
</pallas_src>

<mosaic_0001>
module attributes {stable_mosaic.version = 11 : i64} {
  func.func @xproj_kernel(%arg0: i32, %arg1: memref<64x16xf32, #tpu.memory_space<vmem>>, %arg2: memref<16x256xf32, #tpu.memory_space<vmem>>, %arg3: memref<1x256xf32, #tpu.memory_space<vmem>>, %arg4: memref<64x128xf32, #tpu.memory_space<vmem>>, %arg5: memref<64x128xf32, #tpu.memory_space<vmem>>) attributes {dimension_semantics = [#tpu.dimension_semantics<parallel>], iteration_bounds = array<i64: 1>, scalar_prefetch = 0 : i64, scratch_operands = 0 : i64, tpu.core_type = #tpu.core_type<tc>, window_params = [{transform_indices = @transform_0, window_bounds = array<i64: 64, 16>}, {pipeline_mode = #tpu.pipeline_mode<synchronous>, transform_indices = @transform_1, window_bounds = array<i64: 16, 256>}, {pipeline_mode = #tpu.pipeline_mode<synchronous>, transform_indices = @transform_2, window_bounds = array<i64: 1, 256>}, {transform_indices = @transform_3, window_bounds = array<i64: 64, 128>}, {transform_indices = @transform_4, window_bounds = array<i64: 64, 128>}]} {
    %c0 = arith.constant 0 : index
    %c0_0 = arith.constant 0 : index
    %0 = vector.load %arg1[%c0, %c0_0] : memref<64x16xf32, #tpu.memory_space<vmem>>, vector<64x16xf32>
    %c0_1 = arith.constant 0 : index
    %c0_2 = arith.constant 0 : index
    %1 = vector.load %arg2[%c0_1, %c0_2] : memref<16x256xf32, #tpu.memory_space<vmem>>, vector<16x256xf32>
    %cst = arith.constant dense<0.000000e+00> : vector<64x256xf32>
    %2 = tpu.matmul %0, %1, %cst {dimension_numbers = #tpu.dot_dimension_numbers<[1], [0], [0], [1], [0, 0, 1, 1], [], []>} : vector<64x16xf32>, vector<16x256xf32>, vector<64x256xf32> -> vector<64x256xf32>
    %c0_3 = arith.constant 0 : index
    %c0_4 = arith.constant 0 : index
    %3 = vector.load %arg3[%c0_3, %c0_4] : memref<1x256xf32, #tpu.memory_space<vmem>>, vector<1x256xf32>
    %4 = vector.broadcast %3 : vector<1x256xf32> to vector<64x256xf32>
    %5 = arith.addf %2, %4 : vector<64x256xf32>
    %6 = vector.extract_strided_slice %5 {offsets = [0, 0], sizes = [64, 128], strides = [1, 1]} : vector<64x256xf32> to vector<64x128xf32>
    %c0_5 = arith.constant 0 : index
    %c0_6 = arith.constant 0 : index
    %7 = vector.load %arg4[%c0_5, %c0_6] : memref<64x128xf32, #tpu.memory_space<vmem>>, vector<64x128xf32>
    tpu.vector_store %arg4[%c0_5, %c0_6], %6 {strides = array<i32>} : memref<64x128xf32, #tpu.memory_space<vmem>>, vector<64x128xf32>,
    %8 = vector.extract_strided_slice %5 {offsets = [0, 128], sizes = [64, 128], strides = [1, 1]} : vector<64x256xf32> to vector<64x128xf32>
    %c0_7 = arith.constant 0 : index
    %c0_8 = arith.constant 0 : index
    %9 = vector.load %arg5[%c0_7, %c0_8] : memref<64x128xf32, #tpu.memory_space<vmem>>, vector<64x128xf32>
    tpu.vector_store %arg5[%c0_7, %c0_8], %8 {strides = array<i32>} : memref<64x128xf32, #tpu.memory_space<vmem>>, vector<64x128xf32>,
    return
  }
  func.func @transform_0(%arg0: i32) -> (i32, i32) {
    %c0_i32 = arith.constant 0 : i32
    %c0_i32_0 = arith.constant 0 : i32
    return %arg0, %c0_i32 : i32, i32
  }
  func.func @transform_1(%arg0: i32) -> (i32, i32) {
    %c0_i32 = arith.constant 0 : i32
    %c0_i32_0 = arith.constant 0 : i32
    %c0_i32_1 = arith.constant 0 : i32
    return %c0_i32, %c0_i32_0 : i32, i32
  }
  func.func @transform_2(%arg0: i32) -> (i32, i32) {
    %c0_i32 = arith.constant 0 : i32
    %c0_i32_0 = arith.constant 0 : i32
    %c0_i32_1 = arith.constant 0 : i32
    return %c0_i32, %c0_i32_0 : i32, i32
  }
  func.func @transform_3(%arg0: i32) -> (i32, i32) {
    %c0_i32 = arith.constant 0 : i32
    %c0_i32_0 = arith.constant 0 : i32
    return %arg0, %c0_i32 : i32, i32
  }
  func.func @transform_4(%arg0: i32) -> (i32, i32) {
    %c0_i32 = arith.constant 0 : i32
    %c0_i32_0 = arith.constant 0 : i32
    return %arg0, %c0_i32 : i32, i32
  }
}

</mosaic_0001>

<bundles_post_ra>
// kernel: tpu_custom_call.1
= control target key start
LH: loop header
LB: loop body
LE: loop exit
PB: predicated region body
PF: predicated region fallthrough
CT: control target
= control target key end

     0   :  { %10 = vsyncpa [#allocation3], 0  ;;  %v295_v5 = vmov 0.0   ;;  %vm42_vm0 = vcmask 130048   ;;  %s410_s0 = inlined_call_operand.vmem [shape: f32[64,16], index: 0, kind: input, shape index: {}]   ;;  %s411_s1 = inlined_call_operand.vmem [shape: f32[16,256], index: 1, kind: input, shape index: {}]   ;;  %s412_s2 = inlined_call_operand.vmem [shape: f32[1,256], index: 2, kind: input, shape index: {}]   ;;  %s413_s3 = inlined_call_operand.hbm [shape: f32[64,128], index: 3, kind: output, shape index: {0}]   ;;  %s414_s4 = inlined_call_operand.hbm [shape: f32[64,128], index: 4, kind: output, shape index: {1}]  }
   0x1   :  { %v27_v0 = vld [vmem:[%s411_s1 + $0x8] sm:$0xff]  ;;  %v29_v1 = vld [vmem:[%s411_s1 + $0x18] sm:$0xff]  ;;  %v26_v2 = vld [vmem:[%s411_s1] sm:$0xff]  ;;  %131 = vmatprep.mubr.f32.mxu0 %v295_v5  ;;  %155 = vmatprep.mubr.f32.mxu1 %v295_v5 }
   0x2   :  { %v236_v3 = vpack.c.bf16 %v29_v1, %v27_v0  ;;  %v28_v4 = vld [vmem:[%s411_s1 + $0x10] sm:$0xff]  ;;  %v18_v7 = vld [vmem:[%s410_s0] sm:$0xff] }
   0x3   :  { %v238_v6 = vpack.c.bf16 %v28_v4, %v26_v2  ;;  %v22_v8 = vld [vmem:[%s410_s0 + $0x20] sm:$0xff] }
   0x4   :  { %237 = vmatprep.subr.bf16.mxu0 %v236_v3  ;;  %240 = vmatprep.subr.bf16.mxu1 %v236_v3 }
   0x5   :  { %239 = vmatpush1.bf16.msra.mxu0 %v238_v6  ;;  %241 = vmatpush1.bf16.msra.mxu1 %v238_v6 }
   0x6   :  { %11 = vsyncpa [#allocation5], 0  ;;  %v19_v9 = vld [vmem:[%s410_s0 + $0x8] sm:$0xff]  ;;  %v20_v11 = vld [vmem:[%s410_s0 + $0x10] sm:$0xff]  ;;  %v32_v15 = vlaneseq  ;;  %s297_s14 = smov [#allocation4]  }
   0x7   :  { %v23_v10 = vld [vmem:[%s410_s0 + $0x28] sm:$0xff]  ;;  %v24_v12 = vld [vmem:[%s410_s0 + $0x30] sm:$0xff]  ;;  %v21_v13 = vld [vmem:[%s410_s0 + $0x18] sm:$0xff]  ;;  %s213_s15 = sshll.u32 %s297_s14, 4  ;;  %s374_s15 = int_to_ptr.vmem [resolvable:$true] %s213_s15 }
   0x8   :  { %228 = vmatmul.mubr.msk.f32.vlgmr.msra.gmra.mrb[0].mxu0 %vm42_vm0, %v18_v7  ;;  %232 = vmatmul.mubr.msk.f32.vlgmr.msra.gmra.mrb[0].mxu1 %vm42_vm0, %v22_v8  ;;  %v25_v14 = vld [vmem:[%s410_s0 + $0x38] sm:$0xff]  ;;  %v33_v16 = vshrl.u32 %v32_v15, 7  ;;  %v30_v18 = vld [vmem:[%s412_s2] sm:$0x3]  ;;  %s296_s0 = smov [#allocation2]  }
   0x9   :  { %137 = vmatprep.mubr.f32.mxu0 %v295_v5  ;;  %161 = vmatprep.mubr.f32.mxu1 %v295_v5  ;;  %s201_s2 = sshll.u32 %s296_s0, 4  ;;  %s372_s2 = int_to_ptr.vmem [resolvable:$true] %s201_s2 }
   0xa   :  { %v34_v17 = vsub.s32 0, %v33_v16  ;;  %v38_v19 = vsub.s32 1, %v33_v16  ;;  %s247_s16 = scalar_lea.vmem %s372_s2, 1024  ;;  %p252_p1 = scmp.lt.s32.totalorder %s372_s2, %s372_s2 }
   0xb   :  { %p248_p0 = scmp.ne.s32.totalorder %s372_s2, %s247_s16  ;;  %p253_p2 = scmp.lt.s32.totalorder %s247_s16, %s247_s16 }
   0xc   :  { %229 = vmatmul.mubr.msk.f32.gmra.mrb[2].mxu0 %vm42_vm0, %v19_v9  ;;  %233 = vmatmul.mubr.msk.f32.gmra.mrb[2].mxu1 %vm42_vm0, %v23_v10  ;;  %v35_v20 = vrot.slane %v30_v18, %v34_v17  ;;  %v39_v21 = vrot.slane %v30_v18, %v38_v19 }
   0xd   :  { %143 = vmatprep.mubr.f32.mxu0 %v295_v5  ;;  %167 = vmatprep.mubr.f32.mxu1 %v295_v5  ;;  %p254_p3 = por %p253_p2, %p252_p1 }
   0xf   :  { %p255_p4 = pnand %p254_p3, %p248_p0 }
  0x10   :  { %230 = vmatmul.mubr.msk.f32.gmra.mrb[4].mxu0 %vm42_vm0, %v20_v11  ;;  %234 = vmatmul.mubr.msk.f32.gmra.mrb[4].mxu1 %vm42_vm0, %v24_v12 }
  0x11   :  { %149 = vmatprep.mubr.f32.mxu0 %v295_v5  ;;  %173 = vmatprep.mubr.f32.mxu1 %v295_v5 }
  0x14   :  { %231 = vmatmul.mubr.msk.f32.gmra.mrb[6].mxu0 %vm42_vm0, %v21_v13  ;;  %235 = vmatmul.mubr.msk.f32.gmra.mrb[6].mxu1 %vm42_vm0, %v25_v14 }
  0xdb   :  { %v133_v22 = vpop.f32.mrb[0].mxu0  ;;  %v157_v23 = vpop.f32.mrb[0].mxu1 }
  0xdc   :  { %v134_v24 = vadd.f32 %v133_v22, %v35_v20  ;;  %v158_v25 = vadd.f32 %v157_v23, %v35_v20  ;;  %v135_v26 = vpop.f32.mrb[1].mxu0  ;;  %v159_v27 = vpop.f32.mrb[1].mxu1 }
  0xdd   :  { %v136_v28 = vadd.f32 %v135_v26, %v39_v21  ;;  %v160_v29 = vadd.f32 %v159_v27, %v39_v21 }
  0xde   :  { %180 = vst [vmem:[#allocation2] sm:$0xff] %v134_v24  ;;  %184 = vst [vmem:[#allocation2 + $0x20] sm:$0xff] %v158_v25 }
  0xdf   :  { %188 = vst [vmem:[#allocation4] sm:$0xff] %v136_v28  ;;  %192 = vst [vmem:[#allocation4 + $0x20] sm:$0xff] %v160_v29  ;;  %v139_v30 = vpop.f32.mrb[2].mxu0  ;;  %v163_v31 = vpop.f32.mrb[2].mxu1 }
  0xe0   :  { %v140_v32 = vadd.f32 %v139_v30, %v35_v20  ;;  %v164_v33 = vadd.f32 %v163_v31, %v35_v20  ;;  %v141_v34 = vpop.f32.mrb[3].mxu0  ;;  %v165_v35 = vpop.f32.mrb[3].mxu1 }
  0xe1   :  { %v142_v36 = vadd.f32 %v141_v34, %v39_v21  ;;  %v166_v37 = vadd.f32 %v165_v35, %v39_v21 }
  0xe2   :  { %181 = vst [vmem:[#allocation2 + $0x8] sm:$0xff] %v140_v32  ;;  %185 = vst [vmem:[#allocation2 + $0x28] sm:$0xff] %v164_v33 }
  0xe3   :  { %189 = vst [vmem:[#allocation4 + $0x8] sm:$0xff] %v142_v36  ;;  %193 = vst [vmem:[#allocation4 + $0x28] sm:$0xff] %v166_v37  ;;  %v145_v38 = vpop.f32.mrb[4].mxu0  ;;  %v169_v39 = vpop.f32.mrb[4].mxu1 }
  0xe4   :  { %v146_v40 = vadd.f32 %v145_v38, %v35_v20  ;;  %v170_v41 = vadd.f32 %v169_v39, %v35_v20  ;;  %v147_v42 = vpop.f32.mrb[5].mxu0  ;;  %v171_v43 = vpop.f32.mrb[5].mxu1 }
  0xe5   :  { %v148_v44 = vadd.f32 %v147_v42, %v39_v21  ;;  %v172_v45 = vadd.f32 %v171_v43, %v39_v21 }
  0xe6   :  { %182 = vst [vmem:[#allocation2 + $0x10] sm:$0xff] %v146_v40  ;;  %186 = vst [vmem:[#allocation2 + $0x30] sm:$0xff] %v170_v41 }
  0xe7   :  { %190 = vst [vmem:[#allocation4 + $0x10] sm:$0xff] %v148_v44  ;;  %194 = vst [vmem:[#allocation4 + $0x30] sm:$0xff] %v172_v45  ;;  %v151_v46 = vpop.f32.mrb[6].mxu0  ;;  %v175_v47 = vpop.f32.mrb[6].mxu1 }
  0xe8   :  { %v152_v48 = vadd.f32 %v151_v46, %v35_v20  ;;  %v176_v49 = vadd.f32 %v175_v47, %v35_v20  ;;  %v153_v50 = vpop.f32.mrb[7].mxu0  ;;  %v177_v51 = vpop.f32.mrb[7].mxu1 }
  0xe9   :  { %v154_v52 = vadd.f32 %v153_v50, %v39_v21  ;;  %v178_v53 = vadd.f32 %v177_v51, %v39_v21 }
  0xea   :  { %183 = vst [vmem:[#allocation2 + $0x18] sm:$0xff] %v152_v48  ;;  %187 = vst [vmem:[#allocation2 + $0x38] sm:$0xff] %v176_v49 }
  0xeb   :  { %191 = vst [vmem:[#allocation4 + $0x18] sm:$0xff] %v154_v52  ;;  %195 = vst [vmem:[#allocation4 + $0x38] sm:$0xff] %v178_v53 }
  0xec   :  { %258 = shalt.err (!%p255_p4)
}
  0xed   :  { %s259_s19 = scalar_lea.hbm %s413_s3, 1024 }
  0xee   :  { %p260_p5 = scmp.ne.s32.totalorder %s413_s3, %s259_s19  ;;  %p263_p6 = scmp.lt.u32.totalorder %s259_s19, %s413_s3 }
  0xf0   :  { %p265_p7 = pnand %p263_p6, %p260_p5 }
  0xf2   :  { %268 = shalt.err (!%p265_p7)
}
  0xf3   :  { %s298_s24 = smov 128   ;;  %s299_s25 = smov 8  }
  0xf4   :  { %207 = dma.vmem_to_hbm [thread:$0]  %s372_s2, 1024, %s413_s3, [#allocation3], %s298_s24, %s298_s24, %s299_s25  }
  0xf5   :  { %s269_s27 = scalar_lea.vmem %s374_s15, 1024  ;;  %p274_p9 = scmp.lt.s32.totalorder %s374_s15, %s374_s15 }
  0xf6   :  { %p270_p8 = scmp.ne.s32.totalorder %s374_s15, %s269_s27  ;;  %p275_p10 = scmp.lt.s32.totalorder %s269_s27, %s269_s27 }
  0xf8   :  { %p276_p11 = por %p275_p10, %p274_p9 }
  0xfa   :  { %p277_p12 = pnand %p276_p11, %p270_p8 }
  0xfc   :  { %280 = shalt.err (!%p277_p12)
}
  0xfd   :  { %s281_s30 = scalar_lea.hbm %s414_s4, 1024 }
  0xfe   :  { %p282_p13 = scmp.ne.s32.totalorder %s414_s4, %s281_s30  ;;  %p285_p0 = scmp.lt.u32.totalorder %s281_s30, %s414_s4 }
 0x100   :  { %p287_p1 = pnand %p285_p0, %p282_p13 }
 0x102   :  { %290 = shalt.err (!%p287_p1)
}
 0x103   :  { %219 = dma.vmem_to_hbm [thread:$0]  %s374_s15, 1024, %s414_s4, [#allocation5], %s298_s24, %s298_s24, %s299_s25  }
 0x104   :  { %291 = dma.done.wait [#allocation3], 1024  }
 0x105   :  { %292 = vsyncadd [#allocation3], 4294966272 }
 0x106   :  { %293 = dma.done.wait [#allocation5], 1024  }
 0x107   :  { %294 = vsyncadd [#allocation5], 4294966272 }
 0x108   :  { %226 = vsyncpa [#allocation3], 1 }
 0x109   :  { %227 = vsyncpa [#allocation5], 1 }

</bundles_post_ra>
